<compile_context>
chip_gen: v7x
topology: tpu7x:2x2x1
jax: 0.10.0
libtpu: 0.0.40
codegen_flags: <defaults>
</compile_context>

<pallas_src>
import jax
import jax.numpy as jnp
import numpy as np
from jax.experimental import pallas as pl
from jax.experimental.pallas import tpu as pltpu


def se_block_kernel(x_ref, params_ref, o_ref):
    # x_ref      : (BB, C, HW)  -- channels on sublanes, pixels on lanes
    # params_ref : (C+1, 2*Cr+1) packed excitation parameters:
    #                rows [0:C], cols [0:Cr]        = fc1.weight^T  (C, Cr)
    #                rows [0:C], cols [Cr:2*Cr]     = fc2.weight    (C, Cr)
    #                rows [0:C], col  [2*Cr]        = fc2.bias      (C, 1)
    #                row  [C]  , cols [0:Cr]        = fc1.bias      (1, Cr)
    # o_ref      : (BB, C, HW)
    C = params_ref.shape[0] - 1
    Cr = (params_ref.shape[1] - 1) // 2
    HW = x_ref.shape[2]
    LANE = 128

    # ---- squeeze: global average pool over pixels ---------------------------
    # Pre-accumulate 128-lane chunks on the VALU, then a single cross-lane
    # (XLU) reduce.  Avoids holding a full f32 copy of x for the whole body.
    if HW % LANE == 0 and HW > LANE:
        acc = x_ref[:, :, 0:LANE].astype(jnp.float32)
        for k in range(1, HW // LANE):
            acc = acc + x_ref[:, :, k * LANE:(k + 1) * LANE].astype(jnp.float32)
    else:
        acc = x_ref[...].astype(jnp.float32)
    pooled = jnp.sum(acc, axis=2, keepdims=True) * (1.0 / HW)        # (BB, C, 1)

    # ---- unpack the (tiny) packed parameter block ----------------------------
    params = params_ref[...].astype(jnp.float32)                     # (C+1, 2Cr+1)
    w1t = params[:C, 0:Cr]               # (C, Cr)
    w2 = params[:C, Cr:2 * Cr]           # (C, Cr)
    b2 = params[:C, 2 * Cr:2 * Cr + 1]   # (C, 1)
    b1 = params[C:C + 1, 0:Cr]           # (1, Cr)

    # ---- excite FC1 + ReLU: h[b,j] = relu(sum_c W1[j,c]*pooled[b,c] + b1[j]) --
    h = jnp.sum(w1t[None] * pooled, axis=1, keepdims=True) + b1[None]   # (BB,1,Cr)
    h = jnp.maximum(h, 0.0)

    # ---- excite FC2 + sigmoid: z[b,c] = sum_j W2[c,j]*h[b,j] + b2[c] ---------
    z = jnp.sum(w2[None] * h, axis=2, keepdims=True) + b2[None]         # (BB,C,1)
    gate = pl.reciprocal(1.0 + jnp.exp(-z), approx=False)               # exact sigmoid

    # ---- scale: re-read the x tile, write straight into the output -----------
    o_ref[...] = (x_ref[...] * gate.astype(x_ref.dtype)).astype(o_ref.dtype)


def _pack_params(w1, b1, w2, b2):
    """Pack [fc1.weight^T | fc2.weight | fc2.bias ; fc1.bias] into one array."""
    Cr, C = w1.shape
    packed = jnp.zeros((C + 1, 2 * Cr + 1), dtype=jnp.float32)
    packed = packed.at[:C, 0:Cr].set(jnp.transpose(w1).astype(jnp.float32))
    packed = packed.at[:C, Cr:2 * Cr].set(w2.astype(jnp.float32))
    packed = packed.at[:C, 2 * Cr].set(b2.astype(jnp.float32))
    packed = packed.at[C, 0:Cr].set(b1.astype(jnp.float32))
    return packed


def se_block(x_nchw, w1, b1, w2, b2, *, batch_block=None,
             vmem_budget_bytes=16 * 1024 * 1024):
    """SEBlock forward.

    x_nchw: (B, C, H, W);  w1: (Cr, C) = fc1.weight;  b1: (Cr,);
    w2: (C, Cr) = fc2.weight;  b2: (C,).

    batch_block: images processed per grid step.  Default picks the largest
    divisor of B whose double-buffered in+out footprint fits
    `vmem_budget_bytes` (at small shapes -> the whole batch, one grid step).
    On v7x, batch_block = B // 2 keeps a 2-step 'parallel' grid so the two
    TensorCores split the work.
    """
    B, C, H, W = x_nchw.shape
    Cr = w1.shape[0]
    HW = H * W

    # NCHW -> (B, C, H*W): contiguous flatten, no transpose/pad cost.
    # Lane-dense stores need HW % 128 == 0; otherwise the kernel is still
    # correct (block == full array dims) but stores become masked vst.msk.
    x2 = x_nchw.reshape(B, C, HW)
    packed = _pack_params(w1, b1, w2, b2)

    # --- pick the batch block size from a VMEM budget (v7x-safe) -------------
    bytes_per_image = C * HW * x2.dtype.itemsize
    if batch_block is None:
        batch_block = 1
        for cand in range(B, 0, -1):
            if B % cand == 0 and 4 * cand * bytes_per_image <= vmem_budget_bytes:
                batch_block = cand
                break
    assert B % batch_block == 0, "batch_block must divide the batch size"
    grid = (B // batch_block,)

    # in + out blocks are each double-buffered by the pipeline (~4x one block)
    # plus the small lane/sublane-padded packed-parameter slab.
    param_bytes = ((C + 1 + 7) // 8) * 8 * 128 * 4
    needed = 4 * batch_block * bytes_per_image + 2 * param_bytes
    vmem_limit = int(min(64 << 20, max(needed + (4 << 20), 16 << 20)))

    out2 = pl.pallas_call(
        se_block_kernel,
        out_shape=jax.ShapeDtypeStruct((B, C, HW), x_nchw.dtype),
        grid_spec=pltpu.PrefetchScalarGridSpec(
            num_scalar_prefetch=0,
            grid=grid,
            in_specs=[
                pl.BlockSpec((batch_block, C, HW), lambda n: (n, 0, 0)),
                # Single packed parameter block, resident across all steps.
                pl.BlockSpec((C + 1, 2 * Cr + 1), lambda n: (0, 0)),
            ],
            out_specs=pl.BlockSpec((batch_block, C, HW), lambda n: (n, 0, 0)),
        ),
        compiler_params=pltpu.CompilerParams(
            dimension_semantics=("parallel",),
            vmem_limit_bytes=vmem_limit,
        ),
    )(x2, packed)

    return out2.reshape(B, C, H, W)


def se_block_reference(x, w1, b1, w2, b2):
    """Plain-JAX reference mirroring the PyTorch SEBlock forward."""
    y = jnp.mean(x, axis=(2, 3))                        # (B, C)
    h = jax.nn.relu(y @ w1.T + b1)                      # (B, Cr)
    g = jax.nn.sigmoid(h @ w2.T + b2)                   # (B, C)
    return x * g[:, :, None, None]


if __name__ == "__main__":
    # Shapes consistent with the module: reduction_ratio=16 needs
    # in_channels >= 16, so use B=2, C=64, 16x16 spatial -> hidden Cr=4.
    B, C, H, W = 2, 64, 16, 16
    reduction_ratio = 16
    Cr = C // reduction_ratio

    key = jax.random.PRNGKey(0)
    k_x, k_w1, k_b1, k_w2, k_b2 = jax.random.split(key, 5)

    x = jax.random.normal(k_x, (B, C, H, W), dtype=jnp.float32)

    # nn.Linear weights/biases: fc1 (Cr, C), fc2 (C, Cr).
    w1 = jax.random.normal(k_w1, (Cr, C), dtype=jnp.float32) * 0.2
    b1 = 0.1 * jax.random.normal(k_b1, (Cr,), dtype=jnp.float32)
    w2 = jax.random.normal(k_w2, (C, Cr), dtype=jnp.float32) * 0.2
    b2 = 0.1 * jax.random.normal(k_b2, (C,), dtype=jnp.float32)

    out = se_block(x, w1, b1, w2, b2)
    out = jax.block_until_ready(out)

    ref = se_block_reference(x, w1, b1, w2, b2)
    np.testing.assert_allclose(np.asarray(out), np.asarray(ref),
                               rtol=1e-4, atol=1e-5)
    print("KERNEL_OK")
</pallas_src>

<mosaic_0001>
module attributes {stable_mosaic.version = 11 : i64} {
  func.func @se_block_kernel(%arg0: i32, %arg1: memref<2x64x256xf32, #tpu.memory_space<vmem>>, %arg2: memref<65x9xf32, #tpu.memory_space<vmem>>, %arg3: memref<2x64x256xf32, #tpu.memory_space<vmem>>) attributes {dimension_semantics = [#tpu.dimension_semantics<parallel>], iteration_bounds = array<i64: 1>, scalar_prefetch = 0 : i64, scratch_operands = 0 : i64, tpu.core_type = #tpu.core_type<tc>, window_params = [{transform_indices = @transform_0, window_bounds = array<i64: 2, 64, 256>}, {pipeline_mode = #tpu.pipeline_mode<synchronous>, transform_indices = @transform_1, window_bounds = array<i64: 65, 9>}, {transform_indices = @transform_2, window_bounds = array<i64: 2, 64, 256>}]} {
    %c0 = arith.constant 0 : index
    %c0_0 = arith.constant 0 : index
    %c0_1 = arith.constant 0 : index
    %0 = vector.load %arg1[%c0, %c0_0, %c0_1] : memref<2x64x256xf32, #tpu.memory_space<vmem>>, vector<2x64x128xf32>
    %c0_2 = arith.constant 0 : index
    %c0_3 = arith.constant 0 : index
    %c128 = arith.constant 128 : index
    %1 = vector.load %arg1[%c0_2, %c0_3, %c128] : memref<2x64x256xf32, #tpu.memory_space<vmem>>, vector<2x64x128xf32>
    %2 = arith.addf %0, %1 : vector<2x64x128xf32>
    %cst = arith.constant dense<0.000000e+00> : vector<2x64xf32>
    %3 = vector.multi_reduction <add>, %2, %cst [2] : vector<2x64x128xf32> to vector<2x64xf32>
    %4 = vector.shape_cast %3 : vector<2x64xf32> to vector<2x64x1xf32>
    %cst_4 = arith.constant 3.906250e-03 : f32
    %5 = vector.broadcast %cst_4 : f32 to vector<2x64x1xf32>
    %6 = arith.mulf %4, %5 : vector<2x64x1xf32>
    %c0_5 = arith.constant 0 : index
    %c0_6 = arith.constant 0 : index
    %7 = vector.load %arg2[%c0_5, %c0_6] : memref<65x9xf32, #tpu.memory_space<vmem>>, vector<65x9xf32>
    %8 = vector.extract_strided_slice %7 {offsets = [0, 0], sizes = [64, 4], strides = [1, 1]} : vector<65x9xf32> to vector<64x4xf32>
    %9 = vector.extract_strided_slice %7 {offsets = [0, 4], sizes = [64, 4], strides = [1, 1]} : vector<65x9xf32> to vector<64x4xf32>
    %10 = vector.extract_strided_slice %7 {offsets = [0, 8], sizes = [64, 1], strides = [1, 1]} : vector<65x9xf32> to vector<64x1xf32>
    %11 = vector.extract_strided_slice %7 {offsets = [64, 0], sizes = [1, 4], strides = [1, 1]} : vector<65x9xf32> to vector<1x4xf32>
    %12 = vector.shape_cast %8 : vector<64x4xf32> to vector<1x64x4xf32>
    %13 = vector.broadcast %12 : vector<1x64x4xf32> to vector<2x64x4xf32>
    %14 = vector.broadcast %6 : vector<2x64x1xf32> to vector<2x64x4xf32>
    %15 = arith.mulf %13, %14 : vector<2x64x4xf32>
    %cst_7 = arith.constant dense<0.000000e+00> : vector<2x4xf32>
    %16 = vector.multi_reduction <add>, %15, %cst_7 [1] : vector<2x64x4xf32> to vector<2x4xf32>
    %17 = vector.shape_cast %16 : vector<2x4xf32> to vector<2x1x4xf32>
    %18 = vector.shape_cast %11 : vector<1x4xf32> to vector<1x1x4xf32>
    %19 = vector.broadcast %18 : vector<1x1x4xf32> to vector<2x1x4xf32>
    %20 = arith.addf %17, %19 : vector<2x1x4xf32>
    %cst_8 = arith.constant 0.000000e+00 : f32
    %21 = vector.broadcast %cst_8 : f32 to vector<2x1x4xf32>
    %22 = arith.maximumf %20, %21 : vector<2x1x4xf32>
    %23 = vector.shape_cast %9 : vector<64x4xf32> to vector<1x64x4xf32>
    %24 = vector.broadcast %23 : vector<1x64x4xf32> to vector<2x64x4xf32>
    %25 = vector.broadcast %22 : vector<2x1x4xf32> to vector<2x64x4xf32>
    %26 = arith.mulf %24, %25 : vector<2x64x4xf32>
    %cst_9 = arith.constant dense<0.000000e+00> : vector<2x64xf32>
    %27 = vector.multi_reduction <add>, %26, %cst_9 [2] : vector<2x64x4xf32> to vector<2x64xf32>
    %28 = vector.shape_cast %27 : vector<2x64xf32> to vector<2x64x1xf32>
    %29 = vector.shape_cast %10 : vector<64x1xf32> to vector<1x64x1xf32>
    %30 = vector.broadcast %29 : vector<1x64x1xf32> to vector<2x64x1xf32>
    %31 = arith.addf %28, %30 : vector<2x64x1xf32>
    %cst_10 = arith.constant 0.000000e+00 : f32
    %32 = vector.broadcast %cst_10 : f32 to vector<2x64x1xf32>
    %33 = arith.subf %32, %31 : vector<2x64x1xf32>
    %34 = math.exp %33 : vector<2x64x1xf32>
    %cst_11 = arith.constant 1.000000e+00 : f32
    %35 = vector.broadcast %cst_11 : f32 to vector<2x64x1xf32>
    %36 = arith.addf %35, %34 : vector<2x64x1xf32>
    %37 = tpu.reciprocal %36 : vector<2x64x1xf32> -> vector<2x64x1xf32>
    %c0_12 = arith.constant 0 : index
    %c0_13 = arith.constant 0 : index
    %c0_14 = arith.constant 0 : index
    %38 = vector.load %arg1[%c0_12, %c0_13, %c0_14] : memref<2x64x256xf32, #tpu.memory_space<vmem>>, vector<2x64x256xf32>
    %39 = vector.broadcast %37 : vector<2x64x1xf32> to vector<2x64x256xf32>
    %40 = arith.mulf %38, %39 : vector<2x64x256xf32>
    %c0_15 = arith.constant 0 : index
    %c0_16 = arith.constant 0 : index
    %c0_17 = arith.constant 0 : index
    %41 = vector.load %arg3[%c0_15, %c0_16, %c0_17] : memref<2x64x256xf32, #tpu.memory_space<vmem>>, vector<2x64x256xf32>
    tpu.vector_store %arg3[%c0_15, %c0_16, %c0_17], %40 {strides = array<i32>} : memref<2x64x256xf32, #tpu.memory_space<vmem>>, vector<2x64x256xf32>,
    return
  }
  func.func @transform_0(%arg0: i32) -> (i32, i32, i32) {
    %c0_i32 = arith.constant 0 : i32
    %c0_i32_0 = arith.constant 0 : i32
    %c0_i32_1 = arith.constant 0 : i32
    return %arg0, %c0_i32, %c0_i32_0 : i32, i32, i32
  }
  func.func @transform_1(%arg0: i32) -> (i32, i32) {
    %c0_i32 = arith.constant 0 : i32
    %c0_i32_0 = arith.constant 0 : i32
    %c0_i32_1 = arith.constant 0 : i32
    return %c0_i32, %c0_i32_0 : i32, i32
  }
  func.func @transform_2(%arg0: i32) -> (i32, i32, i32) {
    %c0_i32 = arith.constant 0 : i32
    %c0_i32_0 = arith.constant 0 : i32
    %c0_i32_1 = arith.constant 0 : i32
    return %arg0, %c0_i32, %c0_i32_0 : i32, i32, i32
  }
}

</mosaic_0001>

<bundles_post_ra>
// kernel: tpu_custom_call.1
= control target key start
LH: loop header
LB: loop body
LE: loop exit
PB: predicated region body
PF: predicated region fallthrough
CT: control target
= control target key end

     0   :  { %7 = vsyncpa [#allocation3], 0  ;;  %s1051_s0 = inlined_call_operand.hbm [shape: f32[2,64,256], index: 0, kind: input, shape index: {}]   ;;  %s1052_s1 = inlined_call_operand.vmem [shape: f32[65,9], index: 1, kind: input, shape index: {}]   ;;  %s1053_s2 = inlined_call_operand.hbm [shape: f32[2,64,256], index: 2, kind: output, shape index: {}]  }
   0x1   :  { %8 = vsyncpa [#allocation4], 0  ;;  %s732_s9 = smov [#allocation2]   ;;  %s684_s13 = scalar_lea.hbm %s1051_s0, 4096 }
   0x2   :  { %s14_s10 = sshll.u32 %s732_s9, 4  ;;  %p685_p0 = scmp.ne.s32.totalorder %s1051_s0, %s684_s13  ;;  %s15_s10 = int_to_ptr.vmem [resolvable:$true] %s14_s10 }
   0x3   :  { %p688_p1 = scmp.lt.u32.totalorder %s684_s13, %s1051_s0 }
   0x5   :  { %p690_p2 = pnand %p688_p1, %p685_p0 }
   0x7   :  { %693 = shalt.err (!%p690_p2)
}
   0x8   :  { %s694_s18 = scalar_lea.vmem %s15_s10, 4096  ;;  %p699_p4 = scmp.lt.s32.totalorder %s15_s10, %s15_s10 }
   0x9   :  { %p695_p3 = scmp.ne.s32.totalorder %s15_s10, %s694_s18  ;;  %p700_p5 = scmp.lt.s32.totalorder %s694_s18, %s694_s18 }
   0xb   :  { %p701_p6 = por %p700_p5, %p699_p4 }
   0xd   :  { %p702_p7 = pnand %p701_p6, %p695_p3 }
   0xf   :  { %705 = shalt.err (!%p702_p7)
}
  0x10   :  { %s733_s19 = smov 256   ;;  %s734_s20 = smov 16  }
  0x11   :  { %20 = dma.hbm_to_vmem [thread:$0]  %s1051_s0, 4096, %s15_s10, [#allocation3], %s733_s19, %s733_s19, %s734_s20  }
  0x12   :  { %728 = dma.done.wait [#allocation3], 4096  }
  0x13   :  { %729 = vsyncadd [#allocation3], 4294963200  ;;  %v769_v0 = vld [vmem:[#allocation2] sm:$0xff]  ;;  %v771_v1 = vld [vmem:[#allocation2 + $0x8] sm:$0xff]  ;;  %vm147_vm0 = vcmask 31744   ;;  %s735_s12 = smov 4  }
  0x14   :  { %v773_v2 = vld [vmem:[#allocation2 + $0x10] sm:$0xff]  ;;  %v58_v3 = vadd.f32 %v771_v1, %v769_v0  ;;  %v777_v4 = vld [vmem:[#allocation2 + $0x18] sm:$0xff]  ;;  %v779_v5 = vld [vmem:[#allocation2 + $0x80] sm:$0xff]  ;;  %s736_s13 = smov 124  }
  0x15   :  { %v781_v6 = vld [vmem:[#allocation2 + $0x88] sm:$0xff]  ;;  %v59_v7 = vadd.f32 %v777_v4, %v773_v2  ;;  %v787_v9 = vld [vmem:[#allocation2 + $0x90] sm:$0xff]  ;;  %v789_v10 = vld [vmem:[#allocation2 + $0x98] sm:$0xff] }
  0x16   :  { %74 = vadd.xlane.f32.xlu0 %v58_v3  ;;  %v66_v8 = vadd.f32 %v781_v6, %v779_v5  ;;  %v791_v11 = vld [vmem:[#allocation2 + $0x20] sm:$0xff]  ;;  %v793_v12 = vld [vmem:[#allocation2 + $0x28] sm:$0xff]  ;;  %v67_v13 = vadd.f32 %v789_v10, %v787_v9  ;;  %v803_v17 = vld [vmem:[#allocation2 + $0x30] sm:$0xff] }
  0x17   :  { %v797_v14 = vld [vmem:[#allocation2 + $0xa0] sm:$0xff]  ;;  %v799_v15 = vld [vmem:[#allocation2 + $0xa8] sm:$0xff]  ;;  %v60_v16 = vadd.f32 %v793_v12, %v791_v11  ;;  %v805_v18 = vld [vmem:[#allocation2 + $0x38] sm:$0xff] }
  0x18   :  { %90 = vadd.xlane.f32.xlu1 %v66_v8  ;;  %v68_v19 = vadd.f32 %v799_v15, %v797_v14  ;;  %v809_v20 = vld [vmem:[#allocation2 + $0xb0] sm:$0xff]  ;;  %v811_v21 = vld [vmem:[#allocation2 + $0xb8] sm:$0xff]  ;;  %v61_v22 = vadd.f32 %v805_v18, %v803_v17  ;;  %v815_v23 = vld [vmem:[#allocation2 + $0x40] sm:$0xff] }
  0x19   :  { %v817_v24 = vld [vmem:[#allocation2 + $0x48] sm:$0xff]  ;;  %v69_v25 = vadd.f32 %v811_v21, %v809_v20  ;;  %v821_v26 = vld [vmem:[#allocation2 + $0xc0] sm:$0xff]  ;;  %v827_v29 = vld [vmem:[#allocation2 + $0x50] sm:$0xff] }
  0x1a   :  { %76 = vadd.xlane.f32.xlu0 %v59_v7  ;;  %v823_v27 = vld [vmem:[#allocation2 + $0xc8] sm:$0xff]  ;;  %v62_v28 = vadd.f32 %v817_v24, %v815_v23  ;;  %v829_v30 = vld [vmem:[#allocation2 + $0x58] sm:$0xff]  ;;  %v833_v32 = vld [vmem:[#allocation2 + $0xd0] sm:$0xff] }
  0x1b   :  { %v70_v31 = vadd.f32 %v823_v27, %v821_v26  ;;  %v835_v33 = vld [vmem:[#allocation2 + $0xd8] sm:$0xff]  ;;  %v63_v34 = vadd.f32 %v829_v30, %v827_v29  ;;  %v839_v35 = vld [vmem:[#allocation2 + $0x60] sm:$0xff]  ;;  %v841_v36 = vld [vmem:[#allocation2 + $0x68] sm:$0xff] }
  0x1c   :  { %92 = vadd.xlane.f32.xlu1 %v67_v13  ;;  %v71_v37 = vadd.f32 %v835_v33, %v833_v32  ;;  %v845_v38 = vld [vmem:[#allocation2 + $0xe0] sm:$0xff]  ;;  %v847_v39 = vld [vmem:[#allocation2 + $0xe8] sm:$0xff]  ;;  %v64_v40 = vadd.f32 %v841_v36, %v839_v35  ;;  %v851_v41 = vld [vmem:[#allocation2 + $0x70] sm:$0xff] }
  0x1d   :  { %v853_v42 = vld [vmem:[#allocation2 + $0x78] sm:$0xff]  ;;  %v72_v43 = vadd.f32 %v847_v39, %v845_v38  ;;  %v857_v44 = vld [vmem:[#allocation2 + $0xf0] sm:$0xff]  ;;  %v868_v51 = vld [vmem:[%s1052_s1] sm:$0xff] }
  0x1e   :  { %78 = vadd.xlane.f32.xlu0 %v60_v16  ;;  %v859_v45 = vld [vmem:[#allocation2 + $0xf8] sm:$0xff]  ;;  %v65_v46 = vadd.f32 %v853_v42, %v851_v41  ;;  %v874_v56 = vld [vmem:[%s1052_s1 + $0x8] sm:$0xff]  ;;  %v882_v7 = vld [vmem:[%s1052_s1 + $0x10] sm:$0xff] }
  0x1f   :  { %v73_v47 = vadd.f32 %v859_v45, %v857_v44 }
  0x20   :  { %94 = vadd.xlane.f32.xlu1 %v68_v19 }
  0x22   :  { %80 = vadd.xlane.f32.xlu0 %v61_v22 }
  0x24   :  { %96 = vadd.xlane.f32.xlu1 %v69_v25 }
  0x26   :  { %82 = vadd.xlane.f32.xlu0 %v62_v28 }
  0x28   :  { %98 = vadd.xlane.f32.xlu1 %v70_v31 }
  0x2a   :  { %84 = vadd.xlane.f32.xlu0 %v63_v34 }
  0x2c   :  { %100 = vadd.xlane.f32.xlu1 %v71_v37 }
  0x2e   :  { %86 = vadd.xlane.f32.xlu0 %v64_v40  ;;  %v891_v40 = vld [vmem:[%s1052_s1 + $0x18] sm:$0xff] }
  0x30   :  { %102 = vadd.xlane.f32.xlu1 %v72_v43 }
  0x32   :  { %88 = vadd.xlane.f32.xlu0 %v65_v46 }
  0x34   :  { %104 = vadd.xlane.f32.xlu1 %v73_v47 }
  0xa3   :  { %v75_v48 = vpop.xlane.xlu0 %74 }
  0xa4   :  { %v106_v3 = vmul.f32 0.00390625, %v75_v48 }
  0xa5   :  { %v91_v49 = vpop.xlane.xlu1 %90 }
  0xa6   :  { %v114_v50 = vmul.f32 0.00390625, %v91_v49  ;;  %v131_v37 = vmul.f32 %v868_v51, %v106_v3 }
  0xa7   :  { %v77_v52 = vpop.xlane.xlu0 %76 }
  0xa8   :  { %v139_v53 = vmul.f32 %v868_v51, %v114_v50  ;;  %v107_v61 = vmul.f32 0.00390625, %v77_v52  ;;  %v898_v50 = vld [vmem:[%s1052_s1 + $0x20] sm:$0xff] }
  0xa9   :  { %v93_v54 = vpop.xlane.xlu1 %92 }
  0xaa   :  { %v115_v55 = vmul.f32 0.00390625, %v93_v54  ;;  %v169_v58 = vsel %vm147_vm0, %v139_v53, 0.0  ;;  %v132_v25 = vmul.f32 %v874_v56, %v107_v61 }
  0xab   :  { %v79_v57 = vpop.xlane.xlu0 %78 }
  0xac   :  { %v140_v59 = vmul.f32 %v874_v56, %v115_v55  ;;  %v108_v16 = vmul.f32 0.00390625, %v79_v57  ;;  %v149_v53 = vsel %vm147_vm0, %v132_v25, 0.0 }
  0xad   :  { %v95_v60 = vpop.xlane.xlu1 %94 }
  0xae   :  { %v170_v62 = vsel %vm147_vm0, %v140_v59, 0.0  ;;  %v116_v63 = vmul.f32 0.00390625, %v95_v60  ;;  %v133_v47 = vmul.f32 %v882_v7, %v108_v16  ;;  %v907_v59 = vld [vmem:[%s1052_s1 + $0x28] sm:$0xff] }
  0xaf   :  { %v81_v8 = vpop.xlane.xlu0 %80  ;;  %v171_v13 = vadd.f32 %v170_v62, %v169_v58  ;;  %v148_v58 = vsel %vm147_vm0, %v131_v37, 0.0 }
  0xb0   :  { %v141_v19 = vmul.f32 %v882_v7, %v116_v63  ;;  %v109_v28 = vmul.f32 0.00390625, %v81_v8  ;;  %v151_v62 = vsel %vm147_vm0, %v133_v47, 0.0 }
  0xb1   :  { %v97_v22 = vpop.xlane.xlu1 %96 }
  0xb2   :  { %v172_v31 = vsel %vm147_vm0, %v141_v19, 0.0  ;;  %v117_v34 = vmul.f32 0.00390625, %v97_v22  ;;  %v134_v54 = vmul.f32 %v891_v40, %v109_v28 }
  0xb3   :  { %v83_v43 = vpop.xlane.xlu0 %82  ;;  %v173_v46 = vadd.f32 %v172_v31, %v171_v13  ;;  %v150_v13 = vadd.f32 %v149_v53, %v148_v58 }
  0xb4   :  { %v110_v48 = vmul.f32 0.00390625, %v83_v43  ;;  %v142_v49 = vmul.f32 %v891_v40, %v117_v34  ;;  %v153_v19 = vsel %vm147_vm0, %v134_v54, 0.0  ;;  %v918_v34 = vld [vmem:[%s1052_s1 + $0x30] sm:$0xff] }
  0xb5   :  { %v99_v52 = vpop.xlane.xlu1 %98  ;;  %v152_v31 = vadd.f32 %v151_v62, %v150_v13 }
  0xb6   :  { %v174_v55 = vsel %vm147_vm0, %v142_v49, 0.0  ;;  %v118_v57 = vmul.f32 0.00390625, %v99_v52  ;;  %v135_v63 = vmul.f32 %v898_v50, %v110_v48 }
  0xb7   :  { %v85_v60 = vpop.xlane.xlu0 %84  ;;  %v175_v61 = vadd.f32 %v174_v55, %v173_v46  ;;  %v154_v49 = vadd.f32 %v153_v19, %v152_v31 }
  0xb8   :  { %v111_v3 = vmul.f32 0.00390625, %v85_v60  ;;  %v143_v8 = vmul.f32 %v898_v50, %v118_v57  ;;  %v155_v46 = vsel %vm147_vm0, %v135_v63, 0.0  ;;  %v928_v60 = vld [vmem:[%s1052_s1 + $0x38] sm:$0xff] }
  0xb9   :  { %v101_v16 = vpop.xlane.xlu1 %100  ;;  %v156_v58 = vadd.f32 %v155_v46, %v154_v49 }
  0xba   :  { %v136_v22 = vmul.f32 %v907_v59, %v111_v3  ;;  %v176_v25 = vsel %vm147_vm0, %v143_v8, 0.0  ;;  %v119_v28 = vmul.f32 0.00390625, %v101_v16 }
  0xbb   :  { %v87_v37 = vpop.xlane.xlu0 %86  ;;  %v177_v43 = vadd.f32 %v176_v25, %v175_v61 }
  0xbc   :  { %v112_v47 = vmul.f32 0.00390625, %v87_v37  ;;  %v144_v48 = vmul.f32 %v907_v59, %v119_v28  ;;  %v157_v53 = vsel %vm147_vm0, %v136_v22, 0.0 }
  0xbd   :  { %v103_v52 = vpop.xlane.xlu1 %102  ;;  %v158_v13 = vadd.f32 %v157_v53, %v156_v58 }
  0xbe   :  { %v137_v54 = vmul.f32 %v918_v34, %v112_v47  ;;  %v178_v55 = vsel %vm147_vm0, %v144_v48, 0.0  ;;  %v120_v57 = vmul.f32 0.00390625, %v103_v52 }
  0xbf   :  { %v89_v61 = vpop.xlane.xlu0 %88  ;;  %v179_v62 = vadd.f32 %v178_v55, %v177_v43 }
  0xc0   :  { %v159_v63 = vsel %vm147_vm0, %v137_v54, 0.0  ;;  %v113_v3 = vmul.f32 0.00390625, %v89_v61  ;;  %v145_v8 = vmul.f32 %v918_v34, %v120_v57  ;;  %v194_v57 = vlaneseq }
  0xc1   :  { %v105_v16 = vpop.xlane.xlu1 %104  ;;  %v160_v28 = vadd.f32 %v159_v63, %v158_v13 }
  0xc2   :  { %v138_v19 = vmul.f32 %v928_v60, %v113_v3  ;;  %v180_v22 = vsel %vm147_vm0, %v145_v8, 0.0  ;;  %v121_v25 = vmul.f32 0.00390625, %v105_v16  ;;  %v195_v63 = vshrl.u32 %v194_v57, 7 }
  0xc3   :  { %v181_v31 = vadd.f32 %v180_v22, %v179_v62  ;;  %v130_v62 = vld [vmem:[%s1052_s1 + $0x40] sm:$0x1]  ;;  %s738_s1 = smov [#allocation5]  }
  0xc4   :  { %v161_v37 = vsel %vm147_vm0, %v138_v19, 0.0  ;;  %v146_v46 = vmul.f32 %v928_v60, %v121_v25  ;;  %v196_v22 = vsub.s32 0, %v195_v63  ;;  %s599_s14 = sshll.u32 %s738_s1, 4  ;;  %s600_s14 = int_to_ptr.vmem [resolvable:$true] %s599_s14 }
  0xc5   :  { %v162_v47 = vadd.f32 %v161_v37, %v160_v28  ;;  %s706_s15 = scalar_lea.vmem %s600_s14, 4096  ;;  %p711_p9 = scmp.lt.s32.totalorder %s600_s14, %s600_s14 }
  0xc6   :  { %v182_v43 = vsel %vm147_vm0, %v146_v46, 0.0  ;;  %p707_p8 = scmp.ne.s32.totalorder %s600_s14, %s706_s15  ;;  %p712_p10 = scmp.lt.s32.totalorder %s706_s15, %s706_s15 }
  0xc7   :  { %v163_v48 = vrot.slane %v162_v47, 4  ;;  %v183_v49 = vadd.f32 %v182_v43, %v181_v31 }
  0xc8   :  { %p713_p11 = por %p712_p10, %p711_p9 }
  0xc9   :  { %v164_v52 = vadd.f32 %v163_v48, %v162_v47  ;;  %v184_v54 = vrot.slane %v183_v49, 4 }
  0xca   :  { %p714_p12 = pnand %p713_p11, %p707_p8 }
  0xcb   :  { %v165_v53 = vrot.slane %v164_v52, 2  ;;  %v185_v55 = vadd.f32 %v184_v54, %v183_v49 }
  0xcd   :  { %v166_v58 = vadd.f32 %v165_v53, %v164_v52  ;;  %v186_v61 = vrot.slane %v185_v55, 2 }
  0xcf   :  { %v187_v3 = vadd.f32 %v186_v61, %v185_v55  ;;  %v167_v8 = vrot.slane %v166_v58, 1 }
  0xd1   :  { %v168_v13 = vadd.f32 %v167_v8, %v166_v58  ;;  %v188_v16 = vrot.slane %v187_v3, 1 }
  0xd3   :  { %v190_v19 = vadd.f32 %v168_v13, %v130_v62  ;;  %v189_v25 = vadd.f32 %v188_v16, %v187_v3 }
  0xd5   :  { %v192_v28 = vmax.f32 %v190_v19, 0.0  ;;  %v191_v31 = vadd.f32 %v189_v25, %v130_v62 }
  0xd7   :  { %v197_v37 = vrot.slane %v192_v28, %v196_v22  ;;  %v193_v46 = vmax.f32 %v191_v31, 0.0 }
  0xd9   :  { %204 = vrot.lane.b32.xlu0 %v197_v37, %s735_s12  ;;  %v201_v47 = vrot.slane %v193_v46, %v196_v22 }
  0xdb   :  { %206 = vrot.lane.b32.xlu1 %v201_v47, %s735_s12 }
 0x14b   :  { %v205_v43 = vpop.permute.xlu0 %204 }
 0x14c   :  { %v212_v48 = vmul.f32 %v205_v43, %v882_v7  ;;  %v210_v49 = vmul.f32 %v205_v43, %v868_v51  ;;  %v214_v52 = vmul.f32 %v205_v43, %v898_v50  ;;  %v211_v54 = vmul.f32 %v205_v43, %v874_v56 }
 0x14d   :  { %v216_v53 = vmul.f32 %v205_v43, %v918_v34  ;;  %v213_v55 = vmul.f32 %v205_v43, %v891_v40  ;;  %v207_v57 = vpop.permute.xlu1 %206  ;;  %v215_v61 = vmul.f32 %v205_v43, %v907_v59  ;;  %v217_v8 = vmul.f32 %v205_v43, %v928_v60 }
 0x14e   :  { %246 = vrot.lane.b32.xlu0 %v212_v48, %s736_s13  ;;  %242 = vrot.lane.b32.xlu1 %v210_v49, %s736_s13  ;;  %v218_v58 = vmul.f32 %v207_v57, %v868_v51  ;;  %v220_v3 = vmul.f32 %v207_v57, %v882_v7  ;;  %v222_v63 = vmul.f32 %v207_v57, %v898_v50 }
 0x14f   :  { %v219_v62 = vmul.f32 %v207_v57, %v874_v56  ;;  %v224_v13 = vmul.f32 %v207_v57, %v918_v34  ;;  %v221_v16 = vmul.f32 %v207_v57, %v891_v40  ;;  %v223_v19 = vmul.f32 %v207_v57, %v907_v59 }
 0x150   :  { %v225_v22 = vmul.f32 %v207_v57, %v928_v60 }
 0x152   :  { %250 = vrot.lane.b32.xlu0 %v214_v52, %s736_s13  ;;  %244 = vrot.lane.b32.xlu1 %v211_v54, %s736_s13 }
 0x156   :  { %254 = vrot.lane.b32.xlu0 %v216_v53, %s736_s13  ;;  %248 = vrot.lane.b32.xlu1 %v213_v55, %s736_s13 }
 0x15a   :  { %258 = vrot.lane.b32.xlu0 %v218_v58, %s736_s13  ;;  %252 = vrot.lane.b32.xlu1 %v215_v61, %s736_s13 }
 0x15e   :  { %262 = vrot.lane.b32.xlu0 %v220_v3, %s736_s13  ;;  %256 = vrot.lane.b32.xlu1 %v217_v8, %s736_s13 }
 0x162   :  { %266 = vrot.lane.b32.xlu0 %v222_v63, %s736_s13  ;;  %260 = vrot.lane.b32.xlu1 %v219_v62, %s736_s13 }
 0x166   :  { %270 = vrot.lane.b32.xlu0 %v224_v13, %s736_s13  ;;  %264 = vrot.lane.b32.xlu1 %v221_v16, %s736_s13 }
 0x16a   :  { %268 = vrot.lane.b32.xlu1 %v223_v19, %s736_s13 }
 0x16e   :  { %272 = vrot.lane.b32.xlu1 %v225_v22, %s736_s13 }
 0x1c0   :  { %v247_v25 = vpop.permute.xlu0 %246  ;;  %v243_v28 = vpop.permute.xlu1 %242 }
 0x1c1   :  { %v290_v31 = vsel %vm147_vm0, %v243_v28, 0.0  ;;  %v296_v47 = vsel %vm147_vm0, %v247_v25, 0.0 }
 0x1c2   :  { %291 = vadd.xlane.f32.xlu0 %v290_v31 }
 0x1c4   :  { %v251_v37 = vpop.permute.xlu0 %250  ;;  %v245_v46 = vpop.permute.xlu1 %244 }
 0x1c5   :  { %v293_v43 = vsel %vm147_vm0, %v245_v46, 0.0  ;;  %v302_v55 = vsel %vm147_vm0, %v251_v37, 0.0 }
 0x1c6   :  { %297 = vadd.xlane.f32.xlu0 %v296_v47  ;;  %294 = vadd.xlane.f32.xlu1 %v293_v43 }
 0x1c8   :  { %v255_v48 = vpop.permute.xlu0 %254  ;;  %v249_v49 = vpop.permute.xlu1 %248 }
 0x1c9   :  { %v299_v52 = vsel %vm147_vm0, %v249_v49, 0.0  ;;  %v308_v61 = vsel %vm147_vm0, %v255_v48, 0.0  ;;  %v737_v49 = vmov 8  }
 0x1ca   :  { %300 = vadd.xlane.f32.xlu0 %v299_v52  ;;  %619 = vset.pattern.permute.xlu1 %v737_v49 }
 0x1cb   :  { %618 = vset.pattern.permute.xlu0 %v737_v49 }
 0x1cc   :  { %v259_v54 = vpop.permute.xlu0 %258  ;;  %v253_v53 = vpop.permute.xlu1 %252 }
 0x1cd   :  { %v305_v57 = vsel %vm147_vm0, %v253_v53, 0.0  ;;  %v314_v62 = vsel %vm147_vm0, %v259_v54, 0.0 }
 0x1ce   :  { %303 = vadd.xlane.f32.xlu0 %v302_v55  ;;  %306 = vadd.xlane.f32.xlu1 %v305_v57 }
 0x1d0   :  { %v257_v58 = vpop.permute.xlu1 %256  ;;  %v263_v8 = vpop.permute.xlu0 %262 }
 0x1d1   :  { %v311_v3 = vsel %vm147_vm0, %v257_v58, 0.0  ;;  %v320_v22 = vsel %vm147_vm0, %v263_v8, 0.0 }
 0x1d2   :  { %309 = vadd.xlane.f32.xlu0 %v308_v61  ;;  %312 = vadd.xlane.f32.xlu1 %v311_v3 }
 0x1d4   :  { %v261_v63 = vpop.permute.xlu1 %260  ;;  %v267_v16 = vpop.permute.xlu0 %266 }
 0x1d5   :  { %v317_v13 = vsel %vm147_vm0, %v261_v63, 0.0  ;;  %v326_v31 = vsel %vm147_vm0, %v267_v16, 0.0 }
 0x1d6   :  { %315 = vadd.xlane.f32.xlu0 %v314_v62  ;;  %318 = vadd.xlane.f32.xlu1 %v317_v13 }
 0x1d8   :  { %v265_v19 = vpop.permute.xlu1 %264  ;;  %v271_v46 = vpop.permute.xlu0 %270 }
 0x1d9   :  { %v323_v25 = vsel %vm147_vm0, %v265_v19, 0.0  ;;  %v332_v43 = vsel %vm147_vm0, %v271_v46, 0.0 }
 0x1da   :  { %321 = vadd.xlane.f32.xlu0 %v320_v22  ;;  %324 = vadd.xlane.f32.xlu1 %v323_v25 }
 0x1dc   :  { %v269_v28 = vpop.permute.xlu1 %268 }
 0x1dd   :  { %v329_v37 = vsel %vm147_vm0, %v269_v28, 0.0 }
 0x1de   :  { %327 = vadd.xlane.f32.xlu0 %v326_v31  ;;  %330 = vadd.xlane.f32.xlu1 %v329_v37 }
 0x1e0   :  { %v273_v47 = vpop.permute.xlu1 %272 }
 0x1e1   :  { %v335_v48 = vsel %vm147_vm0, %v273_v47, 0.0 }
 0x1e2   :  { %333 = vadd.xlane.f32.xlu0 %v332_v43  ;;  %336 = vadd.xlane.f32.xlu1 %v335_v48 }
 0x24f   :  { %v292_v52 = vpop.xlane.xlu0 %291 }
 0x250   :  { %v338_v54 = vadd.f32 %v292_v52, %v868_v51 }
 0x252   :  { %v354_v53 = vsub.f32 0.0, %v338_v54 }
 0x253   :  { %v298_v55 = vpop.xlane.xlu0 %297  ;;  %v295_v57 = vpop.xlane.xlu1 %294 }
 0x254   :  { %v370_v58 = vmul.f32 1.442695, %v354_v53  ;;  %v340_v61 = vadd.f32 %v298_v55, %v882_v7  ;;  %v339_v3 = vadd.f32 %v295_v57, %v874_v56 }
 0x256   :  { %620 = vpow2.f32 %v370_v58  ;;  %v356_v8 = vsub.f32 0.0, %v340_v61  ;;  %v355_v63 = vsub.f32 0.0, %v339_v3 }
 0x257   :  { %v301_v62 = vpop.xlane.xlu0 %300 }
 0x258   :  { %v374_v13 = vmul.f32 1.442695, %v356_v8  ;;  %v372_v16 = vmul.f32 1.442695, %v355_v63  ;;  %v341_v19 = vadd.f32 %v301_v62, %v891_v40 }
 0x25a   :  { %622 = vpow2.f32 %v374_v13  ;;  %v357_v22 = vsub.f32 0.0, %v341_v19 }
 0x25b   :  { %624 = vpow2.f32 %v372_v16  ;;  %v304_v25 = vpop.xlane.xlu0 %303  ;;  %v307_v28 = vpop.xlane.xlu1 %306 }
 0x25c   :  { %v376_v31 = vmul.f32 1.442695, %v357_v22  ;;  %v342_v37 = vadd.f32 %v304_v25, %v898_v50  ;;  %v343_v46 = vadd.f32 %v307_v28, %v907_v59 }
 0x25e   :  { %626 = vpow2.f32 %v376_v31  ;;  %v358_v47 = vsub.f32 0.0, %v342_v37  ;;  %v359_v43 = vsub.f32 0.0, %v343_v46 }
 0x25f   :  { %v310_v48 = vpop.xlane.xlu0 %309  ;;  %v313_v49 = vpop.xlane.xlu1 %312 }
 0x260   :  { %v621_v52 = vpop.eup %620  ;;  %v378_v54 = vmul.f32 1.442695, %v358_v47  ;;  %v344_v53 = vadd.f32 %v310_v48, %v918_v34  ;;  %v345_v57 = vadd.f32 %v313_v49, %v928_v60  ;;  %v380_v61 = vmul.f32 1.442695, %v359_v43 }
 0x261   :  { %v402_v55 = vadd.f32 1.0, %v621_v52 }
 0x262   :  { %628 = vpow2.f32 %v378_v54  ;;  %v360_v58 = vsub.f32 0.0, %v344_v53  ;;  %v361_v13 = vsub.f32 0.0, %v345_v57 }
 0x263   :  { %630 = vrcp.f32 %v402_v55  ;;  %v316_v3 = vpop.xlane.xlu0 %315  ;;  %v319_v8 = vpop.xlane.xlu1 %318 }
 0x264   :  { %v623_v63 = vpop.eup %622  ;;  %v347_v16 = vadd.f32 %v319_v8, %v874_v56  ;;  %v382_v22 = vmul.f32 1.442695, %v360_v58  ;;  %v346_v25 = vadd.f32 %v316_v3, %v868_v51  ;;  %632 = vpow2.f32 %v380_v61 }
 0x265   :  { %v625_v62 = vpop.eup %624  ;;  %v404_v28 = vadd.f32 1.0, %v623_v63  ;;  %v384_v48 = vmul.f32 1.442695, %v361_v13 }
 0x266   :  { %v403_v19 = vadd.f32 1.0, %v625_v62  ;;  %v363_v31 = vsub.f32 0.0, %v347_v16  ;;  %v362_v52 = vsub.f32 0.0, %v346_v25 }
 0x267   :  { %v322_v37 = vpop.xlane.xlu0 %321  ;;  %v325_v46 = vpop.xlane.xlu1 %324 }
 0x268   :  { %v627_v47 = vpop.eup %626  ;;  %634 = vrcp.f32 %v403_v19  ;;  %v349_v43 = vadd.f32 %v325_v46, %v891_v40  ;;  %v388_v49 = vmul.f32 1.442695, %v363_v31  ;;  %v348_v54 = vadd.f32 %v322_v37, %v882_v7 }
 0x269   :  { %636 = vpow2.f32 %v382_v22  ;;  %v405_v53 = vadd.f32 1.0, %v627_v47  ;;  %v386_v8 = vmul.f32 1.442695, %v362_v52 }
 0x26a   :  { %v365_v56 = vsub.f32 0.0, %v349_v43  ;;  %638 = vrcp.f32 %v404_v28  ;;  %v364_v40 = vsub.f32 0.0, %v348_v54 }
 0x26b   :  { %v328_v55 = vpop.xlane.xlu0 %327  ;;  %v331_v51 = vpop.xlane.xlu1 %330  ;;  %640 = vpow2.f32 %v388_v49 }
 0x26c   :  { %v629_v57 = vpop.eup %628  ;;  %v392_v58 = vmul.f32 1.442695, %v365_v56  ;;  %v351_v3 = vadd.f32 %v331_v51, %v907_v59  ;;  %642 = vpow2.f32 %v384_v48  ;;  %v350_v62 = vadd.f32 %v328_v55, %v898_v50 }
 0x26d   :  { %v631_v61 = vpop.eup %630  ;;  %644 = vrcp.f32 %v405_v53  ;;  %v406_v63 = vadd.f32 1.0, %v629_v57  ;;  %v390_v59 = vmul.f32 1.442695, %v364_v40 }
 0x26e   :  { %452 = vperm.xlu0 %618, %v631_v61   ;;  %v367_v7 = vsub.f32 0.0, %v351_v3  ;;  %646 = vpow2.f32 %v392_v58  ;;  %v633_v22 = vpop.eup %632  ;;  %v366_v37 = vsub.f32 0.0, %v350_v62 }
 0x26f   :  { %v337_v13 = vpop.xlane.xlu1 %336  ;;  %v334_v16 = vpop.xlane.xlu0 %333  ;;  %648 = vpow2.f32 %v386_v8  ;;  %v407_v43 = vadd.f32 1.0, %v633_v22 }
 0x270   :  { %v353_v19 = vadd.f32 %v337_v13, %v928_v60  ;;  %v396_v25 = vmul.f32 1.442695, %v367_v7  ;;  %650 = vrcp.f32 %v406_v63  ;;  %v352_v46 = vadd.f32 %v334_v16, %v918_v34 }
 0x271   :  { %v394_v60 = vmul.f32 1.442695, %v366_v37 }
 0x272   :  { %v635_v28 = vpop.eup %634  ;;  %v369_v31 = vsub.f32 0.0, %v353_v19  ;;  %652 = vpow2.f32 %v396_v25  ;;  %v368_v54 = vsub.f32 0.0, %v352_v46 }
 0x273   :  { %457 = vperm.xlu1 %619, %v635_v28   ;;  %v637_v47 = vpop.eup %636  ;;  %654 = vpow2.f32 %v390_v59 }
 0x274   :  { %v639_v50 = vpop.eup %638  ;;  %v400_v49 = vmul.f32 1.442695, %v369_v31  ;;  %656 = vrcp.f32 %v407_v43  ;;  %v408_v53 = vadd.f32 1.0, %v637_v47  ;;  %v398_v57 = vmul.f32 1.442695, %v368_v54 }
 0x275   :  { %v641_v48 = vpop.eup %640 }
 0x276   :  { %v411_v52 = vadd.f32 1.0, %v641_v48  ;;  %v643_v56 = vpop.eup %642 }
 0x277   :  { %462 = vperm.xlu1 %619, %v639_v50   ;;  %v645_v55 = vpop.eup %644  ;;  %v409_v61 = vadd.f32 1.0, %v643_v56 }
 0x278   :  { %658 = vrcp.f32 %v411_v52  ;;  %v647_v51 = vpop.eup %646 }
 0x279   :  { %660 = vpow2.f32 %v400_v49  ;;  %v413_v34 = vadd.f32 1.0, %v647_v51  ;;  %v649_v58 = vpop.eup %648 }
 0x27a   :  { %662 = vpow2.f32 %v394_v60  ;;  %v651_v3 = vpop.eup %650  ;;  %v410_v63 = vadd.f32 1.0, %v649_v58 }
 0x27b   :  { %467 = vperm.xlu1 %619, %v645_v55   ;;  %664 = vrcp.f32 %v408_v53 }
 0x27c   :  { %666 = vrcp.f32 %v413_v34  ;;  %v653_v8 = vpop.eup %652 }
 0x27d   :  { %v415_v40 = vadd.f32 1.0, %v653_v8  ;;  %668 = vpow2.f32 %v398_v57  ;;  %v655_v62 = vpop.eup %654 }
 0x27e   :  { %670 = vrcp.f32 %v409_v61  ;;  %v657_v7 = vpop.eup %656  ;;  %v412_v19 = vadd.f32 1.0, %v655_v62 }
 0x27f   :  { %472 = vperm.xlu1 %619, %v651_v3   ;;  %672 = vrcp.f32 %v415_v40 }
 0x280   :  { %674 = vrcp.f32 %v410_v63 }
 0x282   :  { %v659_v13 = vpop.eup %658 }
 0x283   :  { %477 = vperm.xlu1 %619, %v657_v7   ;;  %v661_v16 = vpop.eup %660  ;;  %497 = vperm.xlu0 %618, %v659_v13  }
 0x284   :  { %v663_v22 = vpop.eup %662  ;;  %v417_v25 = vadd.f32 1.0, %v661_v16 }
 0x285   :  { %v665_v28 = vpop.eup %664  ;;  %v414_v59 = vadd.f32 1.0, %v663_v22 }
 0x286   :  { %v667_v31 = vpop.eup %666  ;;  %676 = vrcp.f32 %v417_v25 }
 0x287   :  { %482 = vperm.xlu1 %619, %v665_v28   ;;  %678 = vrcp.f32 %v412_v19  ;;  %507 = vperm.xlu0 %618, %v667_v31   ;;  %v669_v37 = vpop.eup %668 }
 0x288   :  { %v671_v46 = vpop.eup %670  ;;  %680 = vrcp.f32 %v414_v59  ;;  %v416_v43 = vadd.f32 1.0, %v669_v37 }
 0x289   :  { %v673_v47 = vpop.eup %672 }
 0x28a   :  { %v675_v50 = vpop.eup %674  ;;  %682 = vrcp.f32 %v416_v43 }
 0x28b   :  { %487 = vperm.xlu1 %619, %v671_v46   ;;  %517 = vperm.xlu0 %618, %v673_v47  }
 0x28f   :  { %492 = vperm.xlu1 %619, %v675_v50  }
 0x290   :  { %v677_v48 = vpop.eup %676 }
 0x291   :  { %v679_v49 = vpop.eup %678  ;;  %527 = vperm.xlu0 %618, %v677_v48  }
 0x292   :  { %v681_v52 = vpop.eup %680 }
 0x293   :  { %502 = vperm.xlu1 %619, %v679_v49  }
 0x294   :  { %v683_v60 = vpop.eup %682 }
 0x297   :  { %512 = vperm.xlu1 %619, %v681_v52  }
 0x29b   :  { %522 = vperm.xlu1 %619, %v683_v60  }
 0x2ed   :  { %v453_v54 = vpop.permute.xlu0 %452 }
 0x2ee   :  { %v530_v56 = vmul.f32 %v453_v54, %v769_v0  ;;  %v531_v53 = vmul.f32 %v453_v54, %v771_v1 }
 0x2f0   :  { %562 = vst [vmem:[#allocation5] sm:$0xff] %v530_v56  ;;  %563 = vst [vmem:[#allocation5 + $0x8] sm:$0xff] %v531_v53 }
 0x2f2   :  { %v458_v55 = vpop.permute.xlu1 %457 }
 0x2f3   :  { %v532_v51 = vmul.f32 %v458_v55, %v773_v2  ;;  %v533_v34 = vmul.f32 %v458_v55, %v777_v4 }
 0x2f5   :  { %564 = vst [vmem:[#allocation5 + $0x10] sm:$0xff] %v532_v51  ;;  %565 = vst [vmem:[#allocation5 + $0x18] sm:$0xff] %v533_v34 }
 0x2f6   :  { %v463_v57 = vpop.permute.xlu1 %462 }
 0x2f7   :  { %v534_v58 = vmul.f32 %v463_v57, %v791_v11  ;;  %v535_v61 = vmul.f32 %v463_v57, %v793_v12 }
 0x2f9   :  { %566 = vst [vmem:[#allocation5 + $0x20] sm:$0xff] %v534_v58  ;;  %567 = vst [vmem:[#allocation5 + $0x28] sm:$0xff] %v535_v61 }
 0x2fa   :  { %v468_v3 = vpop.permute.xlu1 %467 }
 0x2fb   :  { %v536_v0 = vmul.f32 %v468_v3, %v803_v17  ;;  %v537_v1 = vmul.f32 %v468_v3, %v805_v18 }
 0x2fd   :  { %568 = vst [vmem:[#allocation5 + $0x30] sm:$0xff] %v536_v0  ;;  %569 = vst [vmem:[#allocation5 + $0x38] sm:$0xff] %v537_v1 }
 0x2fe   :  { %v473_v8 = vpop.permute.xlu1 %472 }
 0x2ff   :  { %v538_v2 = vmul.f32 %v473_v8, %v815_v23  ;;  %v539_v4 = vmul.f32 %v473_v8, %v817_v24 }
 0x301   :  { %570 = vst [vmem:[#allocation5 + $0x40] sm:$0xff] %v538_v2  ;;  %571 = vst [vmem:[#allocation5 + $0x48] sm:$0xff] %v539_v4 }
 0x302   :  { %v478_v40 = vpop.permute.xlu1 %477  ;;  %v498_v11 = vpop.permute.xlu0 %497 }
 0x303   :  { %v540_v12 = vmul.f32 %v478_v40, %v827_v29  ;;  %v541_v63 = vmul.f32 %v478_v40, %v829_v30  ;;  %v548_v62 = vmul.f32 %v498_v11, %v787_v9  ;;  %v549_v17 = vmul.f32 %v498_v11, %v789_v10 }
 0x305   :  { %572 = vst [vmem:[#allocation5 + $0x50] sm:$0xff] %v540_v12  ;;  %573 = vst [vmem:[#allocation5 + $0x58] sm:$0xff] %v541_v63 }
 0x306   :  { %580 = vst [vmem:[#allocation5 + $0x90] sm:$0xff] %v548_v62  ;;  %581 = vst [vmem:[#allocation5 + $0x98] sm:$0xff] %v549_v17  ;;  %v483_v18 = vpop.permute.xlu1 %482  ;;  %v508_v23 = vpop.permute.xlu0 %507 }
 0x307   :  { %v542_v24 = vmul.f32 %v483_v18, %v839_v35  ;;  %v543_v7 = vmul.f32 %v483_v18, %v841_v36  ;;  %v552_v13 = vmul.f32 %v508_v23, %v809_v20  ;;  %v553_v29 = vmul.f32 %v508_v23, %v811_v21 }
 0x309   :  { %574 = vst [vmem:[#allocation5 + $0x60] sm:$0xff] %v542_v24  ;;  %575 = vst [vmem:[#allocation5 + $0x68] sm:$0xff] %v543_v7 }
 0x30a   :  { %584 = vst [vmem:[#allocation5 + $0xb0] sm:$0xff] %v552_v13  ;;  %585 = vst [vmem:[#allocation5 + $0xb8] sm:$0xff] %v553_v29  ;;  %v488_v9 = vpop.permute.xlu1 %487  ;;  %v518_v10 = vpop.permute.xlu0 %517 }
 0x30b   :  { %v544_v30 = vmul.f32 %v488_v9, %v851_v41  ;;  %v545_v16 = vmul.f32 %v488_v9, %v853_v42  ;;  %v556_v19 = vmul.f32 %v518_v10, %v833_v32  ;;  %v557_v35 = vmul.f32 %v518_v10, %v835_v33 }
 0x30d   :  { %576 = vst [vmem:[#allocation5 + $0x70] sm:$0xff] %v544_v30  ;;  %577 = vst [vmem:[#allocation5 + $0x78] sm:$0xff] %v545_v16 }
 0x30e   :  { %588 = vst [vmem:[#allocation5 + $0xd0] sm:$0xff] %v556_v19  ;;  %589 = vst [vmem:[#allocation5 + $0xd8] sm:$0xff] %v557_v35  ;;  %v493_v20 = vpop.permute.xlu1 %492 }
 0x30f   :  { %v546_v21 = vmul.f32 %v493_v20, %v779_v5  ;;  %v547_v36 = vmul.f32 %v493_v20, %v781_v6 }
 0x310   :  { %v528_v22 = vpop.permute.xlu0 %527 }
 0x311   :  { %578 = vst [vmem:[#allocation5 + $0x80] sm:$0xff] %v546_v21  ;;  %579 = vst [vmem:[#allocation5 + $0x88] sm:$0xff] %v547_v36  ;;  %v560_v41 = vmul.f32 %v528_v22, %v857_v44  ;;  %v561_v42 = vmul.f32 %v528_v22, %v859_v45 }
 0x312   :  { %v503_v25 = vpop.permute.xlu1 %502 }
 0x313   :  { %v550_v32 = vmul.f32 %v503_v25, %v797_v14  ;;  %v551_v33 = vmul.f32 %v503_v25, %v799_v15  ;;  %592 = vst [vmem:[#allocation5 + $0xf0] sm:$0xff] %v560_v41  ;;  %593 = vst [vmem:[#allocation5 + $0xf8] sm:$0xff] %v561_v42 }
 0x315   :  { %582 = vst [vmem:[#allocation5 + $0xa0] sm:$0xff] %v550_v32  ;;  %583 = vst [vmem:[#allocation5 + $0xa8] sm:$0xff] %v551_v33 }
 0x316   :  { %v513_v28 = vpop.permute.xlu1 %512 }
 0x317   :  { %v554_v5 = vmul.f32 %v513_v28, %v821_v26  ;;  %v555_v6 = vmul.f32 %v513_v28, %v823_v27 }
 0x319   :  { %586 = vst [vmem:[#allocation5 + $0xc0] sm:$0xff] %v554_v5  ;;  %587 = vst [vmem:[#allocation5 + $0xc8] sm:$0xff] %v555_v6 }
 0x31a   :  { %v523_v44 = vpop.permute.xlu1 %522 }
 0x31b   :  { %v558_v45 = vmul.f32 %v523_v44, %v845_v38  ;;  %v559_v14 = vmul.f32 %v523_v44, %v847_v39 }
 0x31d   :  { %590 = vst [vmem:[#allocation5 + $0xe0] sm:$0xff] %v558_v45  ;;  %591 = vst [vmem:[#allocation5 + $0xe8] sm:$0xff] %v559_v14 }
 0x31e   :  { %717 = shalt.err (!%p714_p12)
}
 0x31f   :  { %s718_s18 = scalar_lea.hbm %s1053_s2, 4096 }
 0x320   :  { %p719_p13 = scmp.ne.s32.totalorder %s1053_s2, %s718_s18  ;;  %p722_p0 = scmp.lt.u32.totalorder %s718_s18, %s1053_s2 }
 0x322   :  { %p724_p1 = pnand %p722_p0, %p719_p13 }
 0x324   :  { %727 = shalt.err (!%p724_p1)
}
 0x325   :  { %605 = dma.vmem_to_hbm [thread:$0]  %s600_s14, 4096, %s1053_s2, [#allocation4], %s733_s19, %s733_s19, %s734_s20  }
 0x326   :  { %730 = dma.done.wait [#allocation4], 4096  }
 0x327   :  { %731 = vsyncadd [#allocation4], 4294963200 }
 0x328   :  { %609 = vsyncpa [#allocation3], 1 }
 0x329   :  { %610 = vsyncpa [#allocation4], 1 }

</bundles_post_ra>
